<compile_context>
chip_gen: v7x
topology: tpu7x:2x2x1
jax: 0.10.0
libtpu: 0.0.40
codegen_flags: <defaults>
</compile_context>

<pallas_src>
import functools

import jax
import jax.numpy as jnp
from jax import lax
from jax.experimental import pallas as pl
from jax.experimental.pallas import tpu as pltpu

ITER_CAP = 40      # hard cap; pure bisection shrinks the bracket by 2^-40
TOL_REL = 1e-6     # per-row step tolerance (relative, scale-normalized coords)


# ---------------- affine softplus scale parameterization (module __init__) ----
def _inv_softplus(y):
    return jnp.log(jnp.expm1(y))


def affine_softplus(x, lo=1e-5, ref=1.0):
    shift = _inv_softplus(jnp.float32(1.0))
    return (ref - lo) * jax.nn.softplus(x + shift) + lo


def inv_affine_softplus(y, lo=1e-5, ref=1.0):
    shift = _inv_softplus(jnp.float32(1.0))
    return _inv_softplus((y - lo) / (ref - lo)) - shift


# ---------------- Pallas kernel ----------------------------------------------
def _robust_pool_kernel(scale_ref, x_ref, y_ref, *, total_rows, row_tile,
                        rows_on_lanes):
    """Robust (pseudo-Huber) global pool, one spatial reduction per row.

    rows_on_lanes=True : x_ref is (N, row_tile) -- rows on lanes, state lane-dense
    rows_on_lanes=False: x_ref is (row_tile, N) -- small-R fallback layout
    scale_ref: (1,) f32 in SMEM;  y_ref: (1, row_tile) or (row_tile, 1) f32.
    """
    s = scale_ref[0]
    inv_s = 1.0 / s

    # Pre-scale once: iterate on z' = (y - x)/s so the inner loop is scale-free.
    x = x_ref[...].astype(jnp.float32) * inv_s

    red_axis = 0 if rows_on_lanes else 1      # spatial reduction axis
    row_dim = 1 if rows_on_lanes else 0       # row axis of the per-row state

    # Convex method => initialize at the spatial mean (matches PyTorch branch).
    y0 = jnp.mean(x, axis=red_axis, keepdims=True)
    lo0 = jnp.min(x, axis=red_axis, keepdims=True)   # minimizer bracket
    hi0 = jnp.max(x, axis=red_axis, keepdims=True)

    # Ragged last block: rows past the array edge hold unspecified data; keep
    # them out of the convergence test (their results are dropped on store).
    rows_left = total_rows - pl.program_id(0) * row_tile
    ridx = lax.broadcasted_iota(jnp.int32, y0.shape, dimension=row_dim)
    valid = ridx < rows_left

    def cond(carry):
        it, _, _, _, err = carry
        return jnp.logical_and(it < ITER_CAP, err > 0.0)

    def body(carry):
        it, y, lo, hi, _ = carry
        z = y - x                                   # broadcast over spatial axis
        t = 1.0 + z * z
        r = lax.rsqrt(t)                            # EUP: t^{-1/2}
        grad = jnp.sum(z * r, axis=red_axis, keepdims=True)       # sum phi'(z)/s
        hess = jnp.sum(r * r * r, axis=red_axis, keepdims=True)   # sum t^{-3/2}
        gpos = grad > 0.0                           # bracket update (convexity)
        lo = jnp.where(gpos, lo, y)
        hi = jnp.where(gpos, y, hi)
        # EUP reciprocal; hess underflow -> inf/NaN step -> rejected -> bisection.
        y_n = y - grad * pl.reciprocal(hess, approx=True)
        inside = jnp.logical_and(y_n >= lo, y_n <= hi)
        y_new = jnp.where(inside, y_n, 0.5 * (lo + hi))
        # Per-tile early exit: every valid row moved by less than the tolerance.
        slack = jnp.abs(y_new - y) - TOL_REL * (1.0 + jnp.abs(y_new))
        err = jnp.max(jnp.where(valid, slack, -1.0))
        return it + 1, y_new, lo, hi, err

    # TODO(synk): PyTorch uses torch.optim.LBFGS(max_iter=100); replaced by a
    # tolerance-terminated safeguarded-Newton loop, which converges to the same
    # unique minimizer of the strictly convex pseudo-Huber objective.
    _, y, _, _, _ = lax.while_loop(
        cond, body, (jnp.int32(0), y0, lo0, hi0, jnp.float32(1.0)))

    y_ref[...] = y * s            # undo the pre-scaling


# ---------------- tiling helpers ----------------------------------------------
def _vmem_capacity_bytes(default=64 << 20):
    """Per-core VMEM (v5e/v6e: 128 MiB, v7x: 64 MiB); conservative fallback."""
    try:
        cap = getattr(pltpu.get_tpu_info(), "vmem_capacity_bytes", None)
        if cap:
            return int(cap)
    except Exception:
        pass
    return default


def _bytes_per_elem(itemsize):
    # double-buffered input + f32 pre-scaled copy + compiler-materialized loop
    # temporaries (z, z*r, r^3, ...) -- generous so v7x's 64 MiB is respected.
    return 2 * itemsize + 24


def _plan_lane_major(n_rows, n_cols, itemsize, vmem_cap, max_tile=4096):
    """(row_tile, grid) for the lane-major layout (n_rows >= 128)."""
    budget = vmem_cap // 2
    by_vmem = (budget // (_bytes_per_elem(itemsize) * n_cols)) // 128 * 128
    tile = max(128, min(max_tile, int(by_vmem)))
    if n_rows >= 256:
        # Keep >= 2 grid blocks: hides the input DMA behind compute and lets
        # the 'parallel' axis shard across both TensorCores on v7x.  Cost on
        # single-TC v5e/v6e is only one extra ~0.35us grid step.
        tile = min(tile, ((pl.cdiv(n_rows, 2) + 127) // 128) * 128)
    if tile >= n_rows:
        return n_rows, 1
    return tile, pl.cdiv(n_rows, tile)


# ---------------- pure-JAX converged reference / fallback ---------------------
def _robust_pool_reference(x_nchw, scale, iters=60):
    """Converged safeguarded-Newton solver in plain JAX (same math, exact div)."""
    B, C, H, W = x_nchw.shape
    xs = x_nchw.reshape(B * C, H * W).astype(jnp.float32) / scale
    y = jnp.mean(xs, axis=-1, keepdims=True)
    lo = jnp.min(xs, axis=-1, keepdims=True)
    hi = jnp.max(xs, axis=-1, keepdims=True)

    def step(_, carry):
        y, lo, hi = carry
        z = y - xs
        r = 1.0 / jnp.sqrt(1.0 + z * z)
        grad = jnp.sum(z * r, -1, keepdims=True)
        hess = jnp.sum(r * r * r, -1, keepdims=True)
        gpos = grad > 0.0
        lo = jnp.where(gpos, lo, y)
        hi = jnp.where(gpos, y, hi)
        y_n = y - grad / hess
        inside = (y_n >= lo) & (y_n <= hi)
        y = jnp.where(inside, y_n, 0.5 * (lo + hi))
        return y, lo, hi

    y, _, _ = lax.fori_loop(0, iters, step, (y, lo, hi))
    return (y * scale).reshape(B, C, 1, 1)


# ---------------- wrapper -----------------------------------------------------
def robust_global_pool2d(x_nchw, scale_param):
    """Forward of RobustGlobalPool2d(method=PseudoHuber, is_image=True).

    x_nchw:      (B, C, H, W) float32 (or bfloat16)
    scale_param: (1,) float32  (pre-softplus parameter, i.e. the buffer `scale`)
    returns:     (B, C, 1, 1) float32
    """
    B, C, H, W = x_nchw.shape
    R, N = B * C, H * W
    scale = affine_softplus(scale_param.astype(jnp.float32)).reshape(1)

    x2 = x_nchw.reshape(R, N)
    itemsize = x2.dtype.itemsize
    vmem_cap = _vmem_capacity_bytes()

    rows_on_lanes = R >= 128
    min_rows = 128 if rows_on_lanes else R
    if _bytes_per_elem(itemsize) * N * min_rows > vmem_cap // 2:
        # TODO(synk): chunk H*W with an inner pltpu.emit_pipeline for very large
        # spatial sizes; fall back to the (correct) plain-JAX solver for now.
        return _robust_pool_reference(x_nchw, scale[0])

    if rows_on_lanes:
        # Lane-major working layout: rows on lanes so the per-row Newton state
        # is lane-dense, the spatial reduction runs over sublanes, and the final
        # store is an unmasked lane-dense write.  One-off XLA transpose in HBM.
        xk = x2.T                                           # (N, R)
        row_tile, grid = _plan_lane_major(R, N, itemsize, vmem_cap)
        in_spec = pl.BlockSpec((N, row_tile), lambda i: (0, i))
        out_spec = pl.BlockSpec((1, row_tile), lambda i: (0, i))
        out_shape = jax.ShapeDtypeStruct((1, R), jnp.float32)
    else:
        # Small R: keep rows on sublanes; the tile is tiny and a transpose would
        # put the big (spatial) data path at R/128 lane occupancy.
        xk = x2
        row_tile, grid = R, 1
        in_spec = pl.BlockSpec((R, N), lambda i: (0, 0))
        out_spec = pl.BlockSpec((R, 1), lambda i: (0, 0))
        out_shape = jax.ShapeDtypeStruct((R, 1), jnp.float32)

    est = _bytes_per_elem(itemsize) * N * row_tile + (8 << 20)
    vmem_limit = int(min(vmem_cap * 3 // 4, max(32 << 20, est)))

    typical_iters = 12   # average safeguarded-Newton sweeps before early exit
    cost = pl.CostEstimate(
        flops=int(typical_iters * 9 * R * N),
        transcendentals=int(typical_iters * R * N),
        bytes_accessed=int(R * N * itemsize + R * 4))

    kernel = functools.partial(_robust_pool_kernel, total_rows=R,
                               row_tile=row_tile, rows_on_lanes=rows_on_lanes)

    y = pl.pallas_call(
        kernel,
        out_shape=out_shape,
        grid_spec=pltpu.PrefetchScalarGridSpec(
            num_scalar_prefetch=0,
            grid=(grid,),
            in_specs=[
                pl.BlockSpec(memory_space=pltpu.MemorySpace.SMEM),   # scale scalar
                in_spec,                                             # data tile
            ],
            out_specs=out_spec),
        compiler_params=pltpu.CompilerParams(
            dimension_semantics=("parallel",),
            vmem_limit_bytes=vmem_limit),
        cost_estimate=cost,
    )(scale, xk)

    return y.reshape(B, C, 1, 1)


# ---------------- tests --------------------------------------------------------
if __name__ == "__main__":
    # deterministic parameter init, as in __init__ (scale buffer = 1.0)
    scale_param = inv_affine_softplus(jnp.array([1.0], dtype=jnp.float32))
    scale_val = affine_softplus(scale_param)[0]

    H, W = 16, 16

    # --- case 1: small batch (R=8 -> sublane-major path), injected outliers ---
    B, C = 2, 4
    x = jax.random.normal(jax.random.PRNGKey(0), (B, C, H, W), dtype=jnp.float32)
    x = x.at[:, :, 0, 0].set(25.0)          # outliers: robust pool != mean pool
    out = jax.block_until_ready(robust_global_pool2d(x, scale_param))
    exp = _robust_pool_reference(x, scale_val)
    assert out.shape == (B, C, 1, 1), out.shape
    assert out.dtype == jnp.float32
    assert jnp.allclose(out, exp, atol=1e-4, rtol=1e-4), (
        jnp.max(jnp.abs(out - exp)))

    # --- case 2: R=120 (single full block, not 8/128 aligned) ------------------
    B2, C2 = 3, 40
    xb = jax.random.normal(jax.random.PRNGKey(1), (B2, C2, H, W), jnp.float32)
    out2 = jax.block_until_ready(robust_global_pool2d(xb, scale_param))
    exp2 = _robust_pool_reference(xb, scale_val)
    assert out2.shape == (B2, C2, 1, 1), out2.shape
    assert jnp.allclose(out2, exp2, atol=1e-4, rtol=1e-4), (
        jnp.max(jnp.abs(out2 - exp2)))

    # --- case 3: R=400 -> lane-major path, grid=2, ragged last block -----------
    B3, C3 = 2, 200
    xc = jax.random.normal(jax.random.PRNGKey(2), (B3, C3, H, W), jnp.float32)
    xc = xc.at[:, :, 3, 7].set(-40.0)       # outliers
    out3 = jax.block_until_ready(robust_global_pool2d(xc, scale_param))
    exp3 = _robust_pool_reference(xc, scale_val)
    assert out3.shape == (B3, C3, 1, 1), out3.shape
    assert jnp.allclose(out3, exp3, atol=1e-4, rtol=1e-4), (
        jnp.max(jnp.abs(out3 - exp3)))

    print("KERNEL_OK")
</pallas_src>

<mosaic_0001>
module attributes {stable_mosaic.version = 11 : i64} {
  func.func @_robust_pool_kernel(%arg0: i32, %arg1: memref<1xf32, #tpu.memory_space<smem>>, %arg2: memref<8x256xf32, #tpu.memory_space<vmem>>, %arg3: memref<8x1xf32, #tpu.memory_space<vmem>>) attributes {dimension_semantics = [#tpu.dimension_semantics<parallel>], iteration_bounds = array<i64: 1>, scalar_prefetch = 0 : i64, scratch_operands = 0 : i64, tpu.core_type = #tpu.core_type<tc>, window_params = [{transform_indices = @transform_0, window_bounds = array<i64: 1>}, {pipeline_mode = #tpu.pipeline_mode<synchronous>, transform_indices = @transform_1, window_bounds = array<i64: 8, 256>}, {pipeline_mode = #tpu.pipeline_mode<synchronous>, transform_indices = @transform_2, window_bounds = array<i64: 8, 1>}]} {
    %c0 = arith.constant 0 : index
    %0 = memref.load %arg1[%c0] : memref<1xf32, #tpu.memory_space<smem>>
    %cst = arith.constant 1.000000e+00 : f32
    %1 = arith.divf %cst, %0 : f32
    %c0_0 = arith.constant 0 : index
    %c0_1 = arith.constant 0 : index
    %2 = vector.load %arg2[%c0_0, %c0_1] : memref<8x256xf32, #tpu.memory_space<vmem>>, vector<8x256xf32>
    %3 = vector.broadcast %1 : f32 to vector<8x256xf32>
    %4 = arith.mulf %2, %3 : vector<8x256xf32>
    %cst_2 = arith.constant dense<0.000000e+00> : vector<8xf32>
    %5 = vector.multi_reduction <add>, %4, %cst_2 [1] : vector<8x256xf32> to vector<8xf32>
    %6 = vector.shape_cast %5 : vector<8xf32> to vector<8x1xf32>
    %cst_3 = arith.constant 2.560000e+02 : f32
    %7 = vector.broadcast %cst_3 : f32 to vector<8x1xf32>
    %8 = arith.divf %6, %7 : vector<8x1xf32>
    %cst_4 = arith.constant dense<0x7F800000> : vector<8xf32>
    %9 = vector.multi_reduction <minimumf>, %4, %cst_4 [1] : vector<8x256xf32> to vector<8xf32>
    %10 = vector.shape_cast %9 : vector<8xf32> to vector<8x1xf32>
    %cst_5 = arith.constant dense<0xFF800000> : vector<8xf32>
    %11 = vector.multi_reduction <maximumf>, %4, %cst_5 [1] : vector<8x256xf32> to vector<8xf32>
    %12 = vector.shape_cast %11 : vector<8xf32> to vector<8x1xf32>
    %c8_i32 = arith.constant 8 : i32
    %13 = arith.muli %arg0, %c8_i32 : i32
    %c8_i32_6 = arith.constant 8 : i32
    %14 = arith.subi %c8_i32_6, %13 : i32
    %15 = tpu.iota {dimensions = array<i32: 0>} : vector<8x1xi32>
    %16 = vector.broadcast %14 : i32 to vector<8x1xi32>
    %17 = arith.cmpi slt, %15, %16 : vector<8x1xi32>
    %c0_i32 = arith.constant 0 : i32
    %cst_7 = arith.constant 1.000000e+00 : f32
    %18:5 = scf.while (%arg4 = %c0_i32, %arg5 = %8, %arg6 = %10, %arg7 = %12, %arg8 = %cst_7) : (i32, vector<8x1xf32>, vector<8x1xf32>, vector<8x1xf32>, f32) -> (i32, vector<8x1xf32>, vector<8x1xf32>, vector<8x1xf32>, f32) {
      %c40_i32 = arith.constant 40 : i32
      %22 = arith.cmpi slt, %arg4, %c40_i32 : i32
      %cst_10 = arith.constant 0.000000e+00 : f32
      %23 = arith.cmpf ogt, %arg8, %cst_10 : f32
      %24 = arith.andi %22, %23 : i1
      scf.condition(%24) %arg4, %arg5, %arg6, %arg7, %arg8 : i32, vector<8x1xf32>, vector<8x1xf32>, vector<8x1xf32>, f32
    } do {
    ^bb0(%arg4: i32, %arg5: vector<8x1xf32>, %arg6: vector<8x1xf32>, %arg7: vector<8x1xf32>, %arg8: f32):
      %22 = vector.broadcast %arg5 : vector<8x1xf32> to vector<8x256xf32>
      %23 = arith.subf %22, %4 : vector<8x256xf32>
      %24 = arith.mulf %23, %23 : vector<8x256xf32>
      %cst_10 = arith.constant 1.000000e+00 : f32
      %25 = vector.broadcast %cst_10 : f32 to vector<8x256xf32>
      %26 = arith.addf %25, %24 : vector<8x256xf32>
      %27 = math.rsqrt %26 : vector<8x256xf32>
      %28 = arith.mulf %23, %27 : vector<8x256xf32>
      %cst_11 = arith.constant dense<0.000000e+00> : vector<8xf32>
      %29 = vector.multi_reduction <add>, %28, %cst_11 [1] : vector<8x256xf32> to vector<8xf32>
      %30 = vector.shape_cast %29 : vector<8xf32> to vector<8x1xf32>
      %31 = arith.mulf %27, %27 : vector<8x256xf32>
      %32 = arith.mulf %31, %27 : vector<8x256xf32>
      %cst_12 = arith.constant dense<0.000000e+00> : vector<8xf32>
      %33 = vector.multi_reduction <add>, %32, %cst_12 [1] : vector<8x256xf32> to vector<8xf32>
      %34 = vector.shape_cast %33 : vector<8xf32> to vector<8x1xf32>
      %cst_13 = arith.constant 0.000000e+00 : f32
      %35 = vector.broadcast %cst_13 : f32 to vector<8x1xf32>
      %36 = arith.cmpf ogt, %30, %35 : vector<8x1xf32>
      %37 = arith.select %36, %arg6, %arg5 : vector<8x1xi1>, vector<8x1xf32>
      %38 = arith.select %36, %arg5, %arg7 : vector<8x1xi1>, vector<8x1xf32>
      %39 = tpu.reciprocal %34 {approx = true} : vector<8x1xf32> -> vector<8x1xf32>
      %40 = arith.mulf %30, %39 : vector<8x1xf32>
      %41 = arith.subf %arg5, %40 : vector<8x1xf32>
      %42 = arith.cmpf oge, %41, %37 : vector<8x1xf32>
      %43 = arith.cmpf ole, %41, %38 : vector<8x1xf32>
      %44 = arith.andi %42, %43 : vector<8x1xi1>
      %45 = arith.addf %37, %38 : vector<8x1xf32>
      %cst_14 = arith.constant 5.000000e-01 : f32
      %46 = vector.broadcast %cst_14 : f32 to vector<8x1xf32>
      %47 = arith.mulf %46, %45 : vector<8x1xf32>
      %48 = arith.select %44, %41, %47 : vector<8x1xi1>, vector<8x1xf32>
      %49 = arith.subf %48, %arg5 : vector<8x1xf32>
      %50 = math.absf %49 : vector<8x1xf32>
      %51 = math.absf %48 : vector<8x1xf32>
      %cst_15 = arith.constant 1.000000e+00 : f32
      %52 = vector.broadcast %cst_15 : f32 to vector<8x1xf32>
      %53 = arith.addf %52, %51 : vector<8x1xf32>
      %cst_16 = arith.constant 9.99999997E-7 : f32
      %54 = vector.broadcast %cst_16 : f32 to vector<8x1xf32>
      %55 = arith.mulf %54, %53 : vector<8x1xf32>
      %56 = arith.subf %50, %55 : vector<8x1xf32>
      %cst_17 = arith.constant -1.000000e+00 : f32
      %57 = vector.broadcast %cst_17 : f32 to vector<8x1xf32>
      %58 = arith.select %17, %56, %57 : vector<8x1xi1>, vector<8x1xf32>
      %59 = vector.shape_cast %58 : vector<8x1xf32> to vector<1x8x1xf32>
      %cst_18 = arith.constant dense<0xFF800000> : vector<1xf32>
      %60 = vector.multi_reduction <maximumf>, %59, %cst_18 [1, 2] : vector<1x8x1xf32> to vector<1xf32>
      %61 = vector.shape_cast %60 : vector<1xf32> to vector<1x1x1xf32>
      %62 = vector.extract %61[0, 0, 0] : f32 from vector<1x1x1xf32>
      %c1_i32 = arith.constant 1 : i32
      %63 = arith.addi %arg4, %c1_i32 : i32
      scf.yield %63, %48, %37, %38, %62 : i32, vector<8x1xf32>, vector<8x1xf32>, vector<8x1xf32>, f32
    }
    %19 = vector.broadcast %0 : f32 to vector<8x1xf32>
    %20 = arith.mulf %18#1, %19 : vector<8x1xf32>
    %c0_8 = arith.constant 0 : index
    %c0_9 = arith.constant 0 : index
    %21 = vector.load %arg3[%c0_8, %c0_9] : memref<8x1xf32, #tpu.memory_space<vmem>>, vector<8x1xf32>
    tpu.vector_store %arg3[%c0_8, %c0_9], %20 {strides = array<i32>} : memref<8x1xf32, #tpu.memory_space<vmem>>, vector<8x1xf32>,
    return
  }
  func.func @transform_0(%arg0: i32) -> i32 {
    %c0_i32 = arith.constant 0 : i32
    %c0_i32_0 = arith.constant 0 : i32
    return %c0_i32 : i32
  }
  func.func @transform_1(%arg0: i32) -> (i32, i32) {
    %c0_i32 = arith.constant 0 : i32
    %c0_i32_0 = arith.constant 0 : i32
    %c0_i32_1 = arith.constant 0 : i32
    return %c0_i32, %c0_i32_0 : i32, i32
  }
  func.func @transform_2(%arg0: i32) -> (i32, i32) {
    %c0_i32 = arith.constant 0 : i32
    %c0_i32_0 = arith.constant 0 : i32
    %c0_i32_1 = arith.constant 0 : i32
    return %c0_i32, %c0_i32_0 : i32, i32
  }
}

</mosaic_0001>

<bundles_post_ra>
// kernel: tpu_custom_call.1
= control target key start
LH: loop header
LB: loop body
LE: loop exit
PB: predicated region body
PF: predicated region fallthrough
CT: control target
= control target key end

     0   :  { %8 = vsyncpa [#allocation4], 0  ;;  %s236_s9 = smov [#allocation3]   ;;  %s317_s0 = inlined_call_operand.<no memory space> [shape: f32[1], index: 0, kind: input, shape index: {}]   ;;  %s318_s1 = inlined_call_operand.hbm [shape: f32[8,256], index: 1, kind: input, shape index: {}]   ;;  %s319_s2 = inlined_call_operand.vmem [shape: f32[8,1], index: 2, kind: output, shape index: {}]  }
   0x1   :  { %s17_s10 = sshll.u32 %s236_s9, 4  ;;  %s180_s13 = scalar_lea.hbm %s318_s1, 256  ;;  %s18_s10 = int_to_ptr.vmem [resolvable:$true] %s17_s10 }
   0x2   :  { %p181_p0 = scmp.ne.s32.totalorder %s318_s1, %s180_s13  ;;  %p184_p1 = scmp.lt.u32.totalorder %s180_s13, %s318_s1 }
   0x4   :  { %p186_p2 = pnand %p184_p1, %p181_p0 }
   0x6   :  { %189 = shalt.err (!%p186_p2)
}
   0x7   :  { %s190_s18 = scalar_lea.vmem %s18_s10, 256  ;;  %p195_p4 = scmp.lt.s32.totalorder %s18_s10, %s18_s10 }
   0x8   :  { %p191_p3 = scmp.ne.s32.totalorder %s18_s10, %s190_s18  ;;  %p196_p5 = scmp.lt.s32.totalorder %s190_s18, %s190_s18 }
   0xa   :  { %p197_p6 = por %p196_p5, %p195_p4 }
   0xc   :  { %p198_p7 = pnand %p197_p6, %p191_p3 }
   0xe   :  { %201 = shalt.err (!%p198_p7)
}
   0xf   :  { %20 = dma.hbm_to_vmem [thread:$0]  %s318_s1, 256, %s18_s10, [#allocation4]   ;;  %v25_v0 = vstv %s317_s0 }
  0x10   :  { %218 = dma.done.wait [#allocation4], 256  }
  0x11   :  { %219 = vsyncadd [#allocation4], 4294967040  ;;  %172 = vrcp.f32 %v25_v0  ;;  %v28_v2 = vld [vmem:[#allocation3] sm:$0xff]  ;;  %v29_v3 = vld [vmem:[#allocation3 + $0x8] sm:$0xff]  ;;  %s287_s1 = smov 0  }
  0x1b   :  { %v173_v1 = vpop.eup %172 }
  0x1c   :  { %135 = vpush %v173_v1 }
  0x4d   :  { %s136_s25 = spop %135 }
  0x4e   :  { %v30_v4 = vstv %s136_s25 }
  0x4f   :  { %v271_v5 = vmul.f32 %v30_v4, %v28_v2  ;;  %v273_v6 = vmul.f32 %v30_v4, %v29_v3 }
  0x51   :  { %v41_v7 = vmax.f32 %v271_v5, %v273_v6  ;;  %v33_v8 = vadd.f32 %v273_v6, %v271_v5  ;;  %v38_v9 = vmin.f32 %v271_v5, %v273_v6 }
  0x53   :  { %42 = vmax.xlane.f32.xlu1 %v41_v7  ;;  %34 = vadd.xlane.f32.xlu0 %v33_v8 }
  0x57   :  { %39 = vmin.xlane.f32.xlu0 %v38_v9 }
  0xe0   :  { %v43_v10 = vpop.xlane.xlu1 %42   ;;  %v35_v11 = vpop.xlane.xlu0 %34 }
  0xe1   :  { %v37_v12 = vmul.f32 0.00390625, %v35_v11  }
  0xe4   :  { %v40_v13 = vpop.xlane.xlu0 %39  }
  0xe5 LB: > { %v62_v14 = vsub.f32 %v230_v12, %v271_v5  ;;  %v63_v15 = vsub.f32 %v230_v12, %v273_v6  ;;  %s108_s26 = sadd.s32 1, %s234_s1   ;;  %s234_s1 = sphi %s287_s1, %s321_s1   ;;  %v230_v12 = vphi %v37_v12, %v320_v12   ;;  %v226_v13 = vphi %v40_v13, %v83_v13   ;;  %v222_v10 = vphi %v43_v10, %v84_v10  }
  0xe6   : > { %p56_p8 = scmp.lt.s32.totalorder %s108_s26, 40  ;;  %s321_s1 = smov %s108_s26 }
  0xe7   : > { %v64_v16 = vmul.f32 %v62_v14, %v62_v14  ;;  %v65_v17 = vmul.f32 %v63_v15, %v63_v15 }
  0xe9   : > { %v66_v18 = vadd.f32 1.0, %v64_v16  ;;  %v67_v19 = vadd.f32 1.0, %v65_v17 }
  0xeb   : > { %174 = vrsqrt.f32 %v66_v18 }
  0xec   : > { %176 = vrsqrt.f32 %v67_v19 }
  0xf5   : > { %v175_v20 = vpop.eup %174 }
  0xf6   : > { %v177_v21 = vpop.eup %176  ;;  %v75_v22 = vmul.f32 %v175_v20, %v175_v20  ;;  %v70_v26 = vmul.f32 %v175_v20, %v62_v14 }
  0xf7   : > { %v76_v23 = vmul.f32 %v177_v21, %v177_v21  ;;  %v71_v27 = vmul.f32 %v177_v21, %v63_v15 }
  0xf8   : > { %v77_v24 = vmul.f32 %v175_v20, %v75_v22 }
  0xf9   : > { %v78_v25 = vmul.f32 %v177_v21, %v76_v23  ;;  %v72_v29 = vadd.f32 %v71_v27, %v70_v26 }
  0xfb   : > { %v79_v28 = vadd.f32 %v78_v25, %v77_v24 }
  0xfd   : > { %80 = vadd.xlane.f32.xlu0 %v79_v28 }
 0x101   : > { %73 = vadd.xlane.f32.xlu0 %v72_v29 }
 0x18a   : > { %v81_v30 = vpop.xlane.xlu0 %80 }
 0x18b   : > { %178 = vrcp.f32 %v81_v30 }
 0x18e   : > { %v74_v31 = vpop.xlane.xlu0 %73 }
 0x18f   : > { %vm82_vm0 = vcmp.gt.f32.partialorder %v74_v31, 0.0 }
 0x190   : > { %v83_v13 = vsel %vm82_vm0, %v226_v13, %v230_v12   ;;  %v84_v10 = vsel %vm82_vm0, %v230_v12, %v222_v10  }
 0x191   : > { %v91_v32 = vadd.f32 %v84_v10, %v83_v13 }
 0x193   : > { %v92_v36 = vmul.f32 0.5, %v91_v32 }
 0x195   : > { %v179_v33 = vpop.eup %178 }
 0x196   : > { %v86_v34 = vmul.f32 %v179_v33, %v74_v31 }
 0x198   : > { %v87_v35 = vsub.f32 %v230_v12, %v86_v34 }
 0x19a   : > { %vm88_vm1 = vcmp.ge.f32.partialorder %v87_v35, %v83_v13  ;;  %vm89_vm2 = vcmp.le.f32.partialorder %v87_v35, %v84_v10 }
 0x19b   : > { %vm90_vm3 = vmand %vm88_vm1, %vm89_vm2 }
 0x19c   : > { %v93_v37 = vsel %vm90_vm3, %v87_v35, %v92_v36  }
 0x19d   : > { %v94_v38 = vsub.f32 %v93_v37, %v230_v12  ;;  %v96_v39 = vand.u32 2147483647, %v93_v37  ;;  %v320_v12 = vmov %v93_v37 }
 0x19f   : > { %v97_v40 = vadd.f32 1.0, %v96_v39  ;;  %v95_v41 = vand.u32 2147483647, %v94_v38 }
 0x1a1   : > { %v98_v42 = vmul.f32 1e-06, %v97_v40 }
 0x1a3   : > { %v99_v43 = vsub.f32 %v95_v41, %v98_v42 }
 0x1a5   : > { %v101_v44 = vrot.slane %v99_v43, 4 }
 0x1a7   : > { %v102_v45 = vmax.f32 %v99_v43, %v101_v44 }
 0x1a9   : > { %v103_v46 = vrot.slane %v102_v45, 2 }
 0x1ab   : > { %v104_v47 = vmax.f32 %v102_v45, %v103_v46 }
 0x1ad   : > { %v105_v48 = vrot.slane %v104_v47, 1 }
 0x1af   : > { %v106_v49 = vmax.f32 %v104_v47, %v105_v48 }
 0x1b1   : > { %137 = vpush %v106_v49 }
 0x1e2   : > { %s138_s27 = spop %137 }
 0x1e3   : > { %p57_p9 = scmp.gt.f32.partialorder %s138_s27, 0.0 }
 0x1e5   : > { %p58_p10 = pnand %p57_p9, %p56_p8 }
 0x1e6   :  { %v110_v50 = vmul.f32 (%p58_p10), %v93_v37, %v25_v0  ;;  %vm111_vm4 = vcmask (%p58_p10), 7168  }
 0x1e7   :  { %61 = sbr.rel (!%p58_p10) target bundleno = 229 (0xe5), region = 39 }
 0x1e8   :  { %112 = vst.msk [vmem:[%s319_s2] sm:$0xff] (%p58_p10), %vm111_vm4, %v110_v50 }
 0x1ee   :  { %117 = vsyncpa [#allocation4], 1 }

</bundles_post_ra>
